<compile_context>
chip_gen: v7x
topology: tpu7x:2x2x1
jax: 0.10.0
libtpu: 0.0.40
codegen_flags: <defaults>
</compile_context>

<pallas_src>
import jax
import jax.numpy as jnp
from jax.experimental import pallas as pl
from jax.experimental.pallas import tpu as pltpu


def _base_encoder_kernel(init_ref, fin_ref, wa_ref, wb_ref, bias_ref, o_ref):
    """One (batch, pixel-tile) step: y = relu(wA @ a + wB @ b + bias)."""
    a = init_ref[0]                       # (C, tile_p)  pixels on lanes
    b = fin_ref[0]                        # (C, tile_p)
    y = jnp.dot(wa_ref[...], a, preferred_element_type=jnp.float32)
    y = y + jnp.dot(wb_ref[...], b, preferred_element_type=jnp.float32)
    y = y + bias_ref[...]                 # (c_out, 1) broadcast over lanes
    o_ref[0] = jnp.maximum(y, 0.0).astype(o_ref.dtype)


def base_encoder_forward(init_nchw, fin_nchw, weight, bias, *, mode, tile_p=2048):
    """init/fin: (B, C, H, W) f32.  weight: (C_eff, C_out).  bias: (C_out,)."""
    B, C, H, W = init_nchw.shape
    c_eff = C if mode == "subtract" else 2 * C
    assert weight.shape[0] == c_eff, (weight.shape, c_eff)
    c_out = weight.shape[1]

    # Fold the combine mode into two (c_out, C) weights so the kernel always
    # computes  y = wA @ init + wB @ fin  (no slicing / branching in-kernel).
    if mode == "subtract":                       # enc(init - fin)
        wA, wB = weight.T, -weight.T
    elif mode == "concat":                       # enc([init, fin])
        wA, wB = weight[:C].T, weight[C:].T
    elif mode == "subcat":                       # enc([init, init - fin])
        wA, wB = (weight[:C] + weight[C:]).T, -weight[C:].T
    else:
        raise NotImplementedError(mode)

    # Channels-first keeps pixels on the lane axis -> no NCHW<->NHWC transposes
    # in the wrapper (reshape is free on contiguous NCHW).
    P = H * W
    init_flat = init_nchw.reshape(B, C, P)
    fin_flat = fin_nchw.reshape(B, C, P)

    # Large lane-aligned pixel tile; pad the pixel axis if needed (padded
    # columns are sliced off after the call, so correctness is unaffected).
    tile_p = min(tile_p, pl.cdiv(P, 128) * 128)
    P_pad = pl.cdiv(P, tile_p) * tile_p
    if P_pad != P:
        pad = ((0, 0), (0, 0), (0, P_pad - P))
        init_flat = jnp.pad(init_flat, pad)
        fin_flat = jnp.pad(fin_flat, pad)

    grid = (B, P_pad // tile_p)

    out = pl.pallas_call(
        _base_encoder_kernel,
        out_shape=jax.ShapeDtypeStruct((B, c_out, P_pad), jnp.float32),
        grid_spec=pl.GridSpec(
            grid=grid,
            in_specs=[
                pl.BlockSpec((1, C, tile_p), lambda b, p: (b, 0, p)),   # init
                pl.BlockSpec((1, C, tile_p), lambda b, p: (b, 0, p)),   # fin
                pl.BlockSpec((c_out, C), lambda b, p: (0, 0)),          # wA (resident)
                pl.BlockSpec((c_out, C), lambda b, p: (0, 0)),          # wB (resident)
                pl.BlockSpec((c_out, 1), lambda b, p: (0, 0)),          # bias (resident)
            ],
            out_specs=pl.BlockSpec((1, c_out, tile_p), lambda b, p: (b, 0, p)),
        ),
        compiler_params=pltpu.CompilerParams(
            dimension_semantics=("parallel", "parallel")),
    )(init_flat, fin_flat, wA, wB, bias.reshape(c_out, 1))

    return out[:, :, :P].reshape(B, c_out, H, W)


def _reference(init, fin, weight, bias, mode):
    """Pure-JAX reference mirroring BaseEncoder.forward with a 1x1-conv+ReLU encoder."""
    if mode == "concat":
        x = jnp.concatenate([init, fin], axis=1)
    elif mode == "subtract":
        x = init - fin
    elif mode == "subcat":
        x = jnp.concatenate([init, init - fin], axis=1)
    else:
        raise NotImplementedError(mode)
    y = jnp.einsum("bchw,co->bohw", x, weight) + bias[None, :, None, None]
    return jnp.maximum(y, 0.0)


if __name__ == "__main__":
    B, C, H, W = 2, 4, 16, 16
    C_OUT = 32

    key = jax.random.PRNGKey(0)
    k_init, k_fin, k_w, k_b = jax.random.split(key, 4)

    init = jax.random.normal(k_init, (B, C, H, W), dtype=jnp.float32)
    fin = jax.random.normal(k_fin, (B, C, H, W), dtype=jnp.float32)

    ok = True
    for mode in ("concat", "subtract", "subcat"):
        c_eff = C if mode == "subtract" else 2 * C
        weight = jax.random.normal(k_w, (c_eff, C_OUT), dtype=jnp.float32) * 0.1
        bias = jax.random.normal(k_b, (C_OUT,), dtype=jnp.float32) * 0.1

        out = base_encoder_forward(init, fin, weight, bias, mode=mode)
        out = jax.block_until_ready(out)

        ref = _reference(init, fin, weight, bias, mode)
        if out.shape != (B, C_OUT, H, W) or not jnp.allclose(out, ref, atol=1e-5, rtol=1e-5):
            ok = False
            print(f"MISMATCH in mode={mode}")

    if ok:
        print("KERNEL_OK")
</pallas_src>

<mosaic_0001>
module attributes {stable_mosaic.version = 11 : i64} {
  func.func @_base_encoder_kernel(%arg0: i32, %arg1: i32, %arg2: memref<1x4x256xf32, #tpu.memory_space<vmem>>, %arg3: memref<1x4x256xf32, #tpu.memory_space<vmem>>, %arg4: memref<32x4xf32, #tpu.memory_space<vmem>>, %arg5: memref<32x4xf32, #tpu.memory_space<vmem>>, %arg6: memref<32x1xf32, #tpu.memory_space<vmem>>, %arg7: memref<1x32x256xf32, #tpu.memory_space<vmem>>) attributes {dimension_semantics = [#tpu.dimension_semantics<parallel>, #tpu.dimension_semantics<parallel>], iteration_bounds = array<i64: 2, 1>, scalar_prefetch = 0 : i64, scratch_operands = 0 : i64, tpu.core_type = #tpu.core_type<tc>, window_params = [{transform_indices = @transform_0, window_bounds = array<i64: 1, 4, 256>}, {transform_indices = @transform_1, window_bounds = array<i64: 1, 4, 256>}, {pipeline_mode = #tpu.pipeline_mode<synchronous>, transform_indices = @transform_2, window_bounds = array<i64: 32, 4>}, {pipeline_mode = #tpu.pipeline_mode<synchronous>, transform_indices = @transform_3, window_bounds = array<i64: 32, 4>}, {pipeline_mode = #tpu.pipeline_mode<synchronous>, transform_indices = @transform_4, window_bounds = array<i64: 32, 1>}, {transform_indices = @transform_5, window_bounds = array<i64: 1, 32, 256>}]} {
    %c0 = arith.constant 0 : index
    %c0_0 = arith.constant 0 : index
    %c0_1 = arith.constant 0 : index
    %0 = vector.load %arg2[%c0, %c0_0, %c0_1] : memref<1x4x256xf32, #tpu.memory_space<vmem>>, vector<1x4x256xf32>
    %1 = vector.shape_cast %0 : vector<1x4x256xf32> to vector<4x256xf32>
    %c0_2 = arith.constant 0 : index
    %c0_3 = arith.constant 0 : index
    %c0_4 = arith.constant 0 : index
    %2 = vector.load %arg3[%c0_2, %c0_3, %c0_4] : memref<1x4x256xf32, #tpu.memory_space<vmem>>, vector<1x4x256xf32>
    %3 = vector.shape_cast %2 : vector<1x4x256xf32> to vector<4x256xf32>
    %c0_5 = arith.constant 0 : index
    %c0_6 = arith.constant 0 : index
    %4 = vector.load %arg4[%c0_5, %c0_6] : memref<32x4xf32, #tpu.memory_space<vmem>>, vector<32x4xf32>
    %cst = arith.constant dense<0.000000e+00> : vector<32x256xf32>
    %5 = tpu.matmul %4, %1, %cst {dimension_numbers = #tpu.dot_dimension_numbers<[1], [0], [0], [1], [0, 0, 1, 1], [], []>} : vector<32x4xf32>, vector<4x256xf32>, vector<32x256xf32> -> vector<32x256xf32>
    %c0_7 = arith.constant 0 : index
    %c0_8 = arith.constant 0 : index
    %6 = vector.load %arg5[%c0_7, %c0_8] : memref<32x4xf32, #tpu.memory_space<vmem>>, vector<32x4xf32>
    %cst_9 = arith.constant dense<0.000000e+00> : vector<32x256xf32>
    %7 = tpu.matmul %6, %3, %cst_9 {dimension_numbers = #tpu.dot_dimension_numbers<[1], [0], [0], [1], [0, 0, 1, 1], [], []>} : vector<32x4xf32>, vector<4x256xf32>, vector<32x256xf32> -> vector<32x256xf32>
    %8 = arith.addf %5, %7 : vector<32x256xf32>
    %c0_10 = arith.constant 0 : index
    %c0_11 = arith.constant 0 : index
    %9 = vector.load %arg6[%c0_10, %c0_11] : memref<32x1xf32, #tpu.memory_space<vmem>>, vector<32x1xf32>
    %10 = vector.broadcast %9 : vector<32x1xf32> to vector<32x256xf32>
    %11 = arith.addf %8, %10 : vector<32x256xf32>
    %cst_12 = arith.constant 0.000000e+00 : f32
    %12 = vector.broadcast %cst_12 : f32 to vector<32x256xf32>
    %13 = arith.maximumf %11, %12 : vector<32x256xf32>
    %c0_13 = arith.constant 0 : index
    %c0_14 = arith.constant 0 : index
    %c0_15 = arith.constant 0 : index
    %14 = vector.load %arg7[%c0_13, %c0_14, %c0_15] : memref<1x32x256xf32, #tpu.memory_space<vmem>>, vector<1x32x256xf32>
    %15 = vector.shape_cast %14 : vector<1x32x256xf32> to vector<32x256xf32>
    %16 = vector.shape_cast %13 : vector<32x256xf32> to vector<1x32x256xf32>
    tpu.vector_store %arg7[%c0_13, %c0_14, %c0_15], %16 {strides = array<i32>} : memref<1x32x256xf32, #tpu.memory_space<vmem>>, vector<1x32x256xf32>,
    return
  }
  func.func @transform_0(%arg0: i32, %arg1: i32) -> (i32, i32, i32) {
    %c0_i32 = arith.constant 0 : i32
    %c0_i32_0 = arith.constant 0 : i32
    return %arg0, %c0_i32, %arg1 : i32, i32, i32
  }
  func.func @transform_1(%arg0: i32, %arg1: i32) -> (i32, i32, i32) {
    %c0_i32 = arith.constant 0 : i32
    %c0_i32_0 = arith.constant 0 : i32
    return %arg0, %c0_i32, %arg1 : i32, i32, i32
  }
  func.func @transform_2(%arg0: i32, %arg1: i32) -> (i32, i32) {
    %c0_i32 = arith.constant 0 : i32
    %c0_i32_0 = arith.constant 0 : i32
    %c0_i32_1 = arith.constant 0 : i32
    return %c0_i32, %c0_i32_0 : i32, i32
  }
  func.func @transform_3(%arg0: i32, %arg1: i32) -> (i32, i32) {
    %c0_i32 = arith.constant 0 : i32
    %c0_i32_0 = arith.constant 0 : i32
    %c0_i32_1 = arith.constant 0 : i32
    return %c0_i32, %c0_i32_0 : i32, i32
  }
  func.func @transform_4(%arg0: i32, %arg1: i32) -> (i32, i32) {
    %c0_i32 = arith.constant 0 : i32
    %c0_i32_0 = arith.constant 0 : i32
    %c0_i32_1 = arith.constant 0 : i32
    return %c0_i32, %c0_i32_0 : i32, i32
  }
  func.func @transform_5(%arg0: i32, %arg1: i32) -> (i32, i32, i32) {
    %c0_i32 = arith.constant 0 : i32
    %c0_i32_0 = arith.constant 0 : i32
    return %arg0, %c0_i32, %arg1 : i32, i32, i32
  }
}

</mosaic_0001>

<bundles_post_ra>
// kernel: tpu_custom_call.1
= control target key start
LH: loop header
LB: loop body
LE: loop exit
PB: predicated region body
PF: predicated region fallthrough
CT: control target
= control target key end

     0   :  { %10 = vsyncpa [#allocation3], 0  ;;  %s1070_s0 = inlined_call_operand.vmem [shape: f32[2,4,256], index: 0, kind: input, shape index: {}]   ;;  %s1071_s1 = inlined_call_operand.vmem [shape: f32[2,4,256], index: 1, kind: input, shape index: {}]   ;;  %s1072_s2 = inlined_call_operand.vmem [shape: f32[32,4], index: 2, kind: input, shape index: {}]   ;;  %s1073_s3 = inlined_call_operand.vmem [shape: f32[32,4], index: 3, kind: input, shape index: {}]   ;;  %s1074_s4 = inlined_call_operand.vmem [shape: f32[32,1], index: 4, kind: input, shape index: {}]   ;;  %s1075_s5 = inlined_call_operand.hbm [shape: f32[2,32,256], index: 5, kind: output, shape index: {}]  }
   0x1   :  { %12 = vsyncpa [#allocation3 + $0x1], 0  ;;  %s893_s18 = smov 0   ;;  %s895_s19 = smov 0  }
   0x2   :  { %s897_s20 = smov 0   ;;  %s899_s21 = smov 0  }
   0x3   :  { %s901_s22 = smov 0   ;;  %s903_s23 = smov 0  }
   0x4 LB: > { %s677_s24 = sadd.s32 4294967295, %s856_s23   ;;  %s678_s25 = sadd.s32 4294967294, %s856_s23   ;;  %s856_s23 = sphi %s903_s23, %s18_s23   ;;  %s852_s22 = sphi %s901_s22, %s1082_s22   ;;  %s848_s21 = sphi %s899_s21, %s1081_s21   ;;  %s844_s20 = sphi %s897_s20, %s1080_s20   ;;  %s840_s19 = sphi %s895_s19, %s1079_s19   ;;  %s836_s18 = sphi %s893_s18, %s1078_s18  }
   0x5   : > { %s30_s26 = sadd.s32 1, %s852_s22  ;;  %s158_s27 = sadd.s32 1, %s844_s20 }
   0x6   : > { %p32_p0 = scmp.ge.s32.totalorder %s30_s26, 2  ;;  %p168_p1 = scmp.ne.s32.totalorder %s844_s20, %s840_s19 }
   0x7   : > { %p169_p2 = scmp.eq.s32.totalorder %s677_s24, 1  ;;  %p174_p3 = scmp.ne.s32.totalorder %s840_s19, %s836_s18 }
   0x8   : > { %s1084_s26 = smov (%p32_p0, %s30_s26), 0  ;;  %p175_p5 = scmp.eq.s32.totalorder %s678_s25, 1 }
   0x9   : > { %p933_p4 = por %p169_p2, %p168_p1  ;;  %s153_s29 = ssub.s32 %s852_s22, %s1084_s26 }
   0xa   : > { %p681_p6 = scmp.ge.s32.totalorder %s856_s23, 1  ;;  %p156_p7 = scmp.eq.s32.totalorder %s153_s29, 0 }
   0xb   : > { %p940_p8 = por %p175_p5, %p174_p3  ;;  %p228_p9 = scmp.lt.s32.totalorder %s856_s23, 3 }
   0xc   : > { %s946_s6 = scalar_select %p156_p7, %s844_s20, %s158_s27  }
   0xd   : > { %p229_p10 = pnand %p681_p6, %p228_p9 }
   0xe   : > { %p270_p11 = scmp.lt.s32.totalorder (!%p229_p10), %s848_s21, 1  ;;  %v858_v0 = vmov (!%p229_p10), 0.0   ;;  %v859_v1 = vmov (!%p229_p10), 0   ;;  %v516_v2 = vld [vmem:[%s1074_s4] sm:$0xff] (!%p229_p10)  ;;  %v518_v3 = vld [vmem:[%s1074_s4 + $0x10] sm:$0xff] (!%p229_p10)  ;;  %v517_v4 = vld [vmem:[%s1074_s4 + $0x8] sm:$0xff] (!%p229_p10) }
   0xf   : > { %232 = sbr.rel (%p229_p10) target bundleno = 278 (0x116), region = 40  ;;  %384 = vmatprep.mubr.f32.mxu1 (!%p229_p10), %v858_v0  ;;  %491 = vmatprep.mubr.f32.mxu0 (!%p229_p10), %v858_v0  ;;  %v519_v5 = vld [vmem:[%s1074_s4 + $0x18] sm:$0xff] (!%p229_p10)  ;;  %vm315_vm0 = vcmask (!%p229_p10), 1043456   ;;  %v296_v10 = vld [vmem:[%s1073_s3] sm:$0xff] (!%p229_p10)  ;;  %vm302_vm1 = vcmask (!%p229_p10), 31744   ;;  %v297_v12 = vld [vmem:[%s1073_s3 + $0x8] sm:$0xff] (!%p229_p10) }
  0x10   : > { %774 = vset.pattern.permute.xlu0 (!%p229_p10), %v859_v1  ;;  %775 = vset.pattern.permute.xlu1 (!%p229_p10), %v859_v1  ;;  %v292_v11 = vld [vmem:[%s1072_s2] sm:$0xff] (!%p229_p10)  ;;  %v293_v13 = vld [vmem:[%s1072_s2 + $0x8] sm:$0xff] (!%p229_p10)  ;;  %v298_v14 = vld [vmem:[%s1073_s3 + $0x10] sm:$0xff] (!%p229_p10)  ;;  %s266_s9 = sand.u32 (!%p229_p10), 1, %s840_s19  }
  0x11   : > { %522 = vperm.xlu0 (!%p229_p10), %774, %v516_v2   ;;  %532 = vperm.xlu1 (!%p229_p10), %775, %v518_v3   ;;  %v294_v15 = vld [vmem:[%s1072_s2 + $0x10] sm:$0xff] (!%p229_p10)  ;;  %v299_v16 = vld [vmem:[%s1073_s3 + $0x18] sm:$0xff] (!%p229_p10)  ;;  %s682_s10 = sshll.u32 (!%p229_p10), %s266_s9, 6 }
  0x12   : > { %v295_v17 = vld [vmem:[%s1072_s2 + $0x18] sm:$0xff] (!%p229_p10)  ;;  %s1003_s11 = scalar_lea.vmem (!%p229_p10), [#allocation2], %s682_s10 }
  0x13   : > { %s580_s13 = sshll.u32 (!%p229_p10), %s1003_s11, 4  ;;  %s1018_s13 = int_to_ptr.vmem [resolvable:$true] %s580_s13 }
  0x14   : > { %s778_s17 = scalar_lea.vmem (!%p229_p10), %s1018_s13, 1024 }
  0x15   : > { %527 = vperm.xlu0 (!%p229_p10), %774, %v517_v4   ;;  %537 = vperm.xlu1 (!%p229_p10), %775, %v519_v5   ;;  %p779_p12 = scmp.ne.s32.totalorder (!%p229_p10), %s1018_s13, %s778_s17 }
  0x16   : > { %s271_s7 = scalar_select %p270_p11, %s848_s21, 1 }
  0x17   : > { %p780_p13 = pnand %p779_p12, %p933_p4 }
  0x18   : > { %s704_s12 = sshll.u32 %s271_s7, 3 }
  0x19   : > { %s287_s15 = scalar_lea.vmem %s1071_s1, %s704_s12  ;;  %s277_s24 = scalar_lea.vmem %s1070_s0, %s704_s12 }
  0x1a   : > { %v291_v6 = vld [vmem:[%s287_s15] sm:$0xff]  ;;  %s706_s12 = sshll.u32 %s848_s21, 10  ;;  %s1024_s21 = scalar_lea.sflag [#allocation3], %s266_s9 }
  0x1b   : > { %v290_v7 = vld [vmem:[%s277_s24] sm:$0xff]  ;;  %v301_v8 = vcombine.high %v291_v6, %v291_v6  ;;  %s1016_s16 = scalar_lea.hbm %s1075_s5, %s706_s12  ;;  %p781_p0 = pneg %p780_p13 }
  0x1c   : > { %v410_v9 = vcombine.high %v290_v7, %v290_v7  ;;  %s860_s24 = smov [#allocation2]  }
  0x1d   : > { %687 = vmatprep.subr.msk.mxu1 %vm315_vm0, %v301_v8  ;;  %s782_s25 = sshll.u32 %s860_s24, 4  ;;  %s783_s25 = int_to_ptr.vmem [resolvable:$false] %s782_s25 }
  0x1e   : > { %693 = vmatprep.subr.msk.mxu0 %vm315_vm0, %v410_v9  ;;  %688 = vmatpush1.msk.msra.mxu1 %vm315_vm0, %v291_v6  ;;  %s784_s27 = scalar_lea.vmem %s783_s25, 2048  ;;  %p785_p1 = scmp.lt.s32.totalorder %s1018_s13, %s783_s25 }
  0x1f   : > { %694 = vmatpush1.msk.msra.mxu0 %vm315_vm0, %v290_v7  ;;  %689 = vmatmul.mubr.msk.f32.vlgmr.msra.gmra.mrb[0].mxu1 %vm302_vm1, %v296_v10  ;;  %p786_p2 = scmp.lt.s32.totalorder %s784_s27, %s778_s17 }
  0x20   : > { %695 = vmatmul.mubr.msk.f32.vlgmr.msra.gmra.mrb[0].mxu0 %vm302_vm1, %v292_v11  ;;  %390 = vmatprep.mubr.f32.mxu1 %v858_v0 }
  0x21   : > { %497 = vmatprep.mubr.f32.mxu0 %v858_v0  ;;  %p787_p3 = por %p786_p2, %p785_p1 }
  0x23   : > { %690 = vmatmul.mubr.msk.f32.gmra.mrb[2].mxu1 %vm302_vm1, %v297_v12  ;;  %p788_p5 = pnand %p787_p3, %p781_p0 }
  0x24   : > { %696 = vmatmul.mubr.msk.f32.gmra.mrb[2].mxu0 %vm302_vm1, %v293_v13  ;;  %396 = vmatprep.mubr.f32.mxu1 %v858_v0 }
  0x25   : > { %503 = vmatprep.mubr.f32.mxu0 %v858_v0 }
  0x27   : > { %691 = vmatmul.mubr.msk.f32.gmra.mrb[4].mxu1 %vm302_vm1, %v298_v14 }
  0x28   : > { %697 = vmatmul.mubr.msk.f32.gmra.mrb[4].mxu0 %vm302_vm1, %v294_v15  ;;  %402 = vmatprep.mubr.f32.mxu1 %v858_v0 }
  0x29   : > { %509 = vmatprep.mubr.f32.mxu0 %v858_v0 }
  0x2b   : > { %692 = vmatmul.mubr.msk.f32.gmra.mrb[6].mxu1 %vm302_vm1, %v299_v16 }
  0x2c   : > { %698 = vmatmul.mubr.msk.f32.gmra.mrb[6].mxu0 %vm302_vm1, %v295_v17 }
  0x90   : > { %v523_v18 = vpop.permute.xlu0 %522  ;;  %v533_v37 = vpop.permute.xlu1 %532 }
  0x94   : > { %v528_v26 = vpop.permute.xlu0 %527  ;;  %v538_v56 = vpop.permute.xlu1 %537 }
  0xf2   : > { %v386_v19 = vpop.f32.mrb[0].mxu1 }
  0xf3   : > { %v493_v20 = vpop.f32.mrb[0].mxu0  ;;  %v388_v22 = vpop.f32.mrb[1].mxu1 }
  0xf4   : > { %v494_v21 = vadd.f32 %v493_v20, %v386_v19  ;;  %v495_v23 = vpop.f32.mrb[1].mxu0 }
  0xf5   : > { %v496_v24 = vadd.f32 %v495_v23, %v388_v22 }
  0xf6   : > { %v540_v25 = vadd.f32 %v523_v18, %v494_v21  ;;  %v392_v28 = vpop.f32.mrb[2].mxu1 }
  0xf7   : > { %v541_v27 = vadd.f32 %v523_v18, %v496_v24  ;;  %v499_v29 = vpop.f32.mrb[2].mxu0  ;;  %v394_v32 = vpop.f32.mrb[3].mxu1 }
  0xf8   : > { %v548_v30 = vmax.f32 %v540_v25, 0.0  ;;  %v500_v31 = vadd.f32 %v499_v29, %v392_v28  ;;  %v501_v33 = vpop.f32.mrb[3].mxu0 }
  0xf9   : > { %v549_v34 = vmax.f32 %v541_v27, 0.0  ;;  %v502_v35 = vadd.f32 %v501_v33, %v394_v32 }
  0xfa   : > { %556 = vst [vmem:[%s1003_s11] sm:$0xff] %v548_v30  ;;  %v542_v36 = vadd.f32 %v528_v26, %v500_v31  ;;  %v398_v39 = vpop.f32.mrb[4].mxu1 }
  0xfb   : > { %557 = vst [vmem:[%s1003_s11 + $0x8] sm:$0xff] %v549_v34  ;;  %v543_v38 = vadd.f32 %v528_v26, %v502_v35  ;;  %v505_v40 = vpop.f32.mrb[4].mxu0  ;;  %v400_v43 = vpop.f32.mrb[5].mxu1 }
  0xfc   : > { %v550_v41 = vmax.f32 %v542_v36, 0.0  ;;  %v506_v42 = vadd.f32 %v505_v40, %v398_v39  ;;  %v507_v44 = vpop.f32.mrb[5].mxu0 }
  0xfd   : > { %v551_v45 = vmax.f32 %v543_v38, 0.0  ;;  %v508_v46 = vadd.f32 %v507_v44, %v400_v43 }
  0xfe   : > { %558 = vst [vmem:[%s1003_s11 + $0x10] sm:$0xff] %v550_v41  ;;  %v544_v47 = vadd.f32 %v533_v37, %v506_v42  ;;  %v404_v49 = vpop.f32.mrb[6].mxu1 }
  0xff   : > { %559 = vst [vmem:[%s1003_s11 + $0x18] sm:$0xff] %v551_v45  ;;  %v545_v48 = vadd.f32 %v533_v37, %v508_v46  ;;  %v511_v50 = vpop.f32.mrb[6].mxu0  ;;  %v406_v53 = vpop.f32.mrb[7].mxu1 }
 0x100   : > { %v552_v51 = vmax.f32 %v544_v47, 0.0  ;;  %v512_v52 = vadd.f32 %v511_v50, %v404_v49  ;;  %v513_v54 = vpop.f32.mrb[7].mxu0 }
 0x101   : > { %v553_v55 = vmax.f32 %v545_v48, 0.0  ;;  %v514_v57 = vadd.f32 %v513_v54, %v406_v53 }
 0x102   : > { %560 = vst [vmem:[%s1003_s11 + $0x20] sm:$0xff] %v552_v51  ;;  %v546_v58 = vadd.f32 %v538_v56, %v512_v52 }
 0x103   : > { %561 = vst [vmem:[%s1003_s11 + $0x28] sm:$0xff] %v553_v55  ;;  %v547_v59 = vadd.f32 %v538_v56, %v514_v57 }
 0x104   : > { %v554_v60 = vmax.f32 %v546_v58, 0.0 }
 0x105   : > { %v555_v61 = vmax.f32 %v547_v59, 0.0 }
 0x106   : > { %562 = vst [vmem:[%s1003_s11 + $0x30] sm:$0xff] %v554_v60 }
 0x107   : > { %563 = vst [vmem:[%s1003_s11 + $0x38] sm:$0xff] %v555_v61 }
 0x108   : > { %791 = shalt.err (!%p788_p5)
}
 0x109   : > { %s792_s29 = scalar_lea.hbm %s1016_s16, 1024  ;;  %s796_s9 = scalar_lea.hbm %s1075_s5, 2048 }
 0x10a   : > { %p793_p6 = scmp.ne.s32.totalorder %s1016_s16, %s792_s29  ;;  %p797_p10 = scmp.lt.u32.totalorder %s1016_s16, %s1075_s5 }
 0x10b   : > { %p798_p11 = scmp.lt.u32.totalorder %s796_s9, %s792_s29  ;;  %p800_p13 = scmp.lt.u32.totalorder %s792_s29, %s1016_s16 }
 0x10c   : > { %p794_p7 = pnand %p793_p6, %p933_p4 }
 0x10d   : > { %p799_p12 = por %p798_p11, %p797_p10 }
 0x10e   : > { %p795_p9 = pneg %p794_p7 }
 0x10f   : > { %p801_p0 = por %p800_p13, %p799_p12 }
 0x111   : > { %p802_p1 = pnand %p801_p0, %p795_p9 }
 0x113   : > { %805 = shalt.err (!%p802_p1)
}
 0x114   : > { %s861_s12 = smov 256   ;;  %s862_s14 = smov 16  }
 0x115   : > { %715 = dma.vmem_to_hbm [thread:$0]  (%p933_p4), %s1018_s13, 1024, %s1016_s16, %s1024_s21, %s861_s12, %s861_s12, %s862_s14  }
 0x116 PF: > { %p721_p2 = scmp.ge.s32.totalorder %s856_s23, 2  ;;  %s595_s15 = sand.u32 1, %s836_s18  }
 0x117   : > { %s596_s17 = scalar_lea.sflag [#allocation3], %s595_s15 }
 0x118   : > { %p718_p3 = pnand %p721_p2, %p940_p8 }
 0x11a   : > { %831 = dma.done.wait (!%p718_p3), %s596_s17, 1024  }
 0x11b   : > { %833 = vsyncadd (!%p718_p3), %s596_s17, 4294966272  ;;  %s18_s23 = sadd.s32 1, %s856_s23   ;;  %s1078_s18 = smov %s840_s19 }
 0x11c   : > { %p15_p5 = scmp.ge.s32.totalorder %s18_s23, 4   ;;  %s1079_s19 = smov %s844_s20 }
 0x11d   : > { %s1080_s20 = smov %s946_s6  ;;  %s1081_s21 = smov %s852_s22 }
 0x11e   : > { %s1082_s22 = smov %s1084_s26  ;;  %17 = sbr.rel (!%p15_p5) target bundleno = 4 (0x4), region = 78 }
 0x125   :  { %601 = vsyncpa [#allocation3], 1 }
 0x126   :  { %603 = vsyncpa [#allocation3 + $0x1], 1 }

</bundles_post_ra>
